<compile_context>
chip_gen: v6e
topology: v6e:2x2x1
jax: 0.10.0
libtpu: 0.0.40
codegen_flags: <defaults>
</compile_context>

<pallas_src>
import jax
import jax.numpy as jnp
from jax.experimental import pallas as pl
from jax.experimental.pallas import tpu as pltpu


def prediction_refinement_forward(x_ncl, params, *, kernel_size, dilation,
                                  scale_factor, tile_m=128,
                                  compute_dtype=jnp.float32):
    """Fused Pallas forward for PredictionRefinement (cnn_name='conv1d', eval mode).

    Args:
      x_ncl:   (N, C_in, L) input, PyTorch Conv1d layout.
      params:  (w1, b1, w2, b2); w1 (K, C_out, C_in), w2 (K, C_out, C_out),
               b1/b2 (C_out,).  (w[k] == PyTorch conv.weight[:, :, k].)
      kernel_size, dilation, scale_factor: module config (stride == 1).
      tile_m:  conv1-output positions per grid step; tile_m * scale_factor must be
               a multiple of 128 (lane-dense output stores).
      compute_dtype: jnp.float32 or jnp.bfloat16 MXU inputs (f32 accumulation).

    Returns:
      (N, C_out, L * scale_factor) float32.
    """
    if dilation * (kernel_size - 1) % 2 != 0:
        raise ValueError('Please re-input dilation, kernel_size!!!')
    K, dil, sf = kernel_size, dilation, scale_factor
    pad = dil * (K - 1) // 2
    w1, b1, w2, b2 = params
    N, Cin, L = x_ncl.shape
    Cout = w1.shape[1]

    Tm = tile_m
    assert (Tm * sf) % 128 == 0, "tile_m * scale_factor must be a multiple of 128"
    n_tiles = -(-L // Tm)
    Lp = n_tiles * Tm
    Hh = -(-pad // sf)        # halo (in conv1-output positions) needed by conv2
    Th = Tm + 2 * Hh          # conv1-output positions computed per tile (w/ halo)
    Tx = Th + 2 * pad         # input positions needed per tile
    Tsf = Tm * sf             # output positions stored per tile (multiple of 128)
    off0 = Hh * sf - pad      # first conv2 tap offset inside the upsampled tile
    cdt = compute_dtype

    # --- host-side prep (one cheap pass over the small Cin-channel input) ---
    # Zero-pad along L ("same" padding + round L up to a tile multiple), then slice
    # out the per-tile haloed windows so every grid step reads a plain block.
    xp = jnp.pad(x_ncl.astype(cdt),
                 ((0, 0), (0, 0), (Hh + pad, Hh + pad + Lp - L)))
    x_win = jnp.stack(
        [jax.lax.slice_in_dim(xp, t * Tm, t * Tm + Tx, axis=2)
         for t in range(n_tiles)], axis=1)                     # (N, n_tiles, Cin, Tx)

    # 0/1 nearest-upsample selection matrix: (h @ U)[c, u] = h[c, u // sf].
    U = (jnp.arange(Th * sf)[None, :] // sf ==
         jnp.arange(Th)[:, None]).astype(cdt)                  # (Th, Th*sf)

    w1c = w1.astype(cdt)                                       # (K, Cout, Cin)
    w2c = w2.astype(cdt)                                       # (K, Cout, Cout)
    b1c = b1.reshape(Cout, 1).astype(jnp.float32)
    b2c = b2.reshape(Cout, 1).astype(jnp.float32)

    def kernel(x_ref, w1_ref, b1_ref, u_ref, w2_ref, b2_ref, o_ref):
        t = pl.program_id(1)
        x = x_ref[...]                                         # (Cin, Tx)

        # conv1: K tap matmuls, (Cout,Cin)@(Cin,Th), f32 accumulation.
        h = jnp.zeros((Cout, Th), jnp.float32)
        for k in range(K):                                     # static unroll
            h += jnp.dot(w1_ref[k], x[:, k * dil:k * dil + Th],
                         preferred_element_type=jnp.float32)
        h += b1_ref[...]

        # Zero conv1 outputs that fall outside the true [0, L) range so the
        # upsampled signal is correctly zero-padded for conv2 ("same" padding).
        m_glob = t * Tm - Hh + jax.lax.broadcasted_iota(jnp.int32, (1, Th), 1)
        h = jnp.where((m_glob >= 0) & (m_glob < L), h, 0.0)

        # Nearest upsample on the MXU (also does the interleave lane-densely).
        h_up = jnp.dot(h.astype(cdt), u_ref[...],
                       preferred_element_type=jnp.float32)     # (Cout, Th*sf)
        hu = h_up.astype(cdt)

        # conv2: K tap matmuls on the upsampled tile.
        acc = jnp.zeros((Cout, Tsf), jnp.float32)
        for k in range(K):                                     # static unroll
            o = off0 + k * dil
            acc += jnp.dot(w2_ref[k], hu[:, o:o + Tsf],
                           preferred_element_type=jnp.float32)
        o_ref[...] = (acc + b2_ref[...]).astype(o_ref.dtype)

    out_padded = pl.pallas_call(
        kernel,
        out_shape=jax.ShapeDtypeStruct((N, Cout, n_tiles * Tsf), jnp.float32),
        grid=(N, n_tiles),
        in_specs=[
            pl.BlockSpec((None, None, Cin, Tx), lambda n, t: (n, t, 0, 0)),
            pl.BlockSpec((K, Cout, Cin), lambda n, t: (0, 0, 0)),
            pl.BlockSpec((Cout, 1), lambda n, t: (0, 0)),
            pl.BlockSpec((Th, Th * sf), lambda n, t: (0, 0)),
            pl.BlockSpec((K, Cout, Cout), lambda n, t: (0, 0, 0)),
            pl.BlockSpec((Cout, 1), lambda n, t: (0, 0)),
        ],
        out_specs=pl.BlockSpec((None, Cout, Tsf), lambda n, t: (n, 0, t)),
        compiler_params=pltpu.CompilerParams(
            dimension_semantics=("parallel", "parallel"),
            vmem_limit_bytes=32 * 1024 * 1024),
    )(x_win, w1c, b1c, U, w2c, b2c)

    return out_padded[:, :, :L * sf]


def _reference_forward(x_ncl, params, *, kernel_size, dilation, scale_factor):
    """Pure-JAX reference (lax.conv) for a correctness check."""
    pad = dilation * (kernel_size - 1) // 2
    w1, b1, w2, b2 = params

    def conv(x, w_koi, b):
        w_oih = jnp.transpose(w_koi, (1, 2, 0))   # (K,Cout,Cin) -> (Cout,Cin,K)
        y = jax.lax.conv_general_dilated(
            x, w_oih, window_strides=(1,), padding=[(pad, pad)],
            rhs_dilation=(dilation,),
            dimension_numbers=("NCH", "OIH", "NCH"))
        return y + b[None, :, None]

    h = conv(x_ncl.astype(jnp.float32), w1, b1)
    h_up = jnp.repeat(h, scale_factor, axis=2)     # nearest upsample
    return conv(h_up, w2, b2)


if __name__ == "__main__":
    def run_case(key, *, N, Cin, Cout, L, kernel_size, dilation, scale_factor,
                 tile_m, compute_dtype, atol, rtol, name):
        k_x, k_w1, k_b1, k_w2, k_b2 = jax.random.split(key, 5)
        x = jax.random.normal(k_x, (N, Cin, L), dtype=jnp.float32)
        w1 = 0.1 * jax.random.normal(k_w1, (kernel_size, Cout, Cin), jnp.float32)
        b1 = 0.1 * jax.random.normal(k_b1, (Cout,), jnp.float32)
        w2 = 0.1 * jax.random.normal(k_w2, (kernel_size, Cout, Cout), jnp.float32)
        b2 = 0.1 * jax.random.normal(k_b2, (Cout,), jnp.float32)
        params = (w1, b1, w2, b2)

        out = prediction_refinement_forward(
            x, params, kernel_size=kernel_size, dilation=dilation,
            scale_factor=scale_factor, tile_m=tile_m,
            compute_dtype=compute_dtype)
        out = jax.block_until_ready(out)
        ref = jax.block_until_ready(_reference_forward(
            x, params, kernel_size=kernel_size, dilation=dilation,
            scale_factor=scale_factor))

        assert out.shape == (N, Cout, L * scale_factor), (name, out.shape)
        err = float(jnp.max(jnp.abs(out - ref)))
        assert jnp.allclose(out, ref, atol=atol, rtol=rtol), (name, err)

    root = jax.random.PRNGKey(0)
    k_a, k_b = jax.random.split(root)

    # Config A: module-default-ish shapes; f32 compute (strict) + bf16 compute (loose).
    run_case(k_a, N=2, Cin=4, Cout=8, L=16, kernel_size=3, dilation=1,
             scale_factor=2, tile_m=128, compute_dtype=jnp.float32,
             atol=1e-3, rtol=1e-3, name="A_f32")
    run_case(k_a, N=2, Cin=4, Cout=8, L=16, kernel_size=3, dilation=1,
             scale_factor=2, tile_m=128, compute_dtype=jnp.bfloat16,
             atol=3e-2, rtol=5e-2, name="A_bf16")

    # Config B: multi-tile L with a ragged right edge, larger kernel/dilation.
    run_case(k_b, N=1, Cin=6, Cout=8, L=150, kernel_size=5, dilation=2,
             scale_factor=2, tile_m=64, compute_dtype=jnp.float32,
             atol=1e-3, rtol=1e-3, name="B_f32")

    print("KERNEL_OK")
</pallas_src>

<mosaic_0001>
module attributes {stable_mosaic.version = 11 : i64} {
  func.func @kernel(%arg0: i32, %arg1: i32, %arg2: memref<1x1x4x132xf32, #tpu.memory_space<vmem>>, %arg3: memref<3x8x4xf32, #tpu.memory_space<vmem>>, %arg4: memref<8x1xf32, #tpu.memory_space<vmem>>, %arg5: memref<130x260xf32, #tpu.memory_space<vmem>>, %arg6: memref<3x8x8xf32, #tpu.memory_space<vmem>>, %arg7: memref<8x1xf32, #tpu.memory_space<vmem>>, %arg8: memref<1x8x256xf32, #tpu.memory_space<vmem>>) attributes {dimension_semantics = [#tpu.dimension_semantics<parallel>, #tpu.dimension_semantics<parallel>], iteration_bounds = array<i64: 2, 1>, scalar_prefetch = 0 : i64, scratch_operands = 0 : i64, tpu.core_type = #tpu.core_type<tc>, window_params = [{transform_indices = @transform_0, window_bounds = array<i64: 1, 1, 4, 132>}, {pipeline_mode = #tpu.pipeline_mode<synchronous>, transform_indices = @transform_1, window_bounds = array<i64: 3, 8, 4>}, {pipeline_mode = #tpu.pipeline_mode<synchronous>, transform_indices = @transform_2, window_bounds = array<i64: 8, 1>}, {pipeline_mode = #tpu.pipeline_mode<synchronous>, transform_indices = @transform_3, window_bounds = array<i64: 130, 260>}, {pipeline_mode = #tpu.pipeline_mode<synchronous>, transform_indices = @transform_4, window_bounds = array<i64: 3, 8, 8>}, {pipeline_mode = #tpu.pipeline_mode<synchronous>, transform_indices = @transform_5, window_bounds = array<i64: 8, 1>}, {transform_indices = @transform_6, window_bounds = array<i64: 1, 8, 256>}]} {
    %c0 = arith.constant 0 : index
    %c0_0 = arith.constant 0 : index
    %c0_1 = arith.constant 0 : index
    %c0_2 = arith.constant 0 : index
    %0 = vector.load %arg2[%c0, %c0_0, %c0_1, %c0_2] : memref<1x1x4x132xf32, #tpu.memory_space<vmem>>, vector<1x1x4x132xf32>
    %1 = vector.shape_cast %0 : vector<1x1x4x132xf32> to vector<4x132xf32>
    %cst = arith.constant 0.000000e+00 : f32
    %2 = vector.broadcast %cst : f32 to vector<8x130xf32>
    %c0_3 = arith.constant 0 : index
    %c0_4 = arith.constant 0 : index
    %c0_5 = arith.constant 0 : index
    %3 = vector.load %arg3[%c0_3, %c0_4, %c0_5] : memref<3x8x4xf32, #tpu.memory_space<vmem>>, vector<1x8x4xf32>
    %4 = vector.shape_cast %3 : vector<1x8x4xf32> to vector<8x4xf32>
    %5 = vector.extract_strided_slice %1 {offsets = [0, 0], sizes = [4, 130], strides = [1, 1]} : vector<4x132xf32> to vector<4x130xf32>
    %cst_6 = arith.constant dense<0.000000e+00> : vector<8x130xf32>
    %6 = tpu.matmul %4, %5, %cst_6 {dimension_numbers = #tpu.dot_dimension_numbers<[1], [0], [0], [1], [0, 0, 1, 1], [], []>} : vector<8x4xf32>, vector<4x130xf32>, vector<8x130xf32> -> vector<8x130xf32>
    %7 = arith.addf %2, %6 : vector<8x130xf32>
    %c1 = arith.constant 1 : index
    %c0_7 = arith.constant 0 : index
    %c0_8 = arith.constant 0 : index
    %8 = vector.load %arg3[%c1, %c0_7, %c0_8] : memref<3x8x4xf32, #tpu.memory_space<vmem>>, vector<1x8x4xf32>
    %9 = vector.shape_cast %8 : vector<1x8x4xf32> to vector<8x4xf32>
    %10 = vector.extract_strided_slice %1 {offsets = [0, 1], sizes = [4, 130], strides = [1, 1]} : vector<4x132xf32> to vector<4x130xf32>
    %cst_9 = arith.constant dense<0.000000e+00> : vector<8x130xf32>
    %11 = tpu.matmul %9, %10, %cst_9 {dimension_numbers = #tpu.dot_dimension_numbers<[1], [0], [0], [1], [0, 0, 1, 1], [], []>} : vector<8x4xf32>, vector<4x130xf32>, vector<8x130xf32> -> vector<8x130xf32>
    %12 = arith.addf %7, %11 : vector<8x130xf32>
    %c2 = arith.constant 2 : index
    %c0_10 = arith.constant 0 : index
    %c0_11 = arith.constant 0 : index
    %13 = vector.load %arg3[%c2, %c0_10, %c0_11] : memref<3x8x4xf32, #tpu.memory_space<vmem>>, vector<1x8x4xf32>
    %14 = vector.shape_cast %13 : vector<1x8x4xf32> to vector<8x4xf32>
    %15 = vector.extract_strided_slice %1 {offsets = [0, 2], sizes = [4, 130], strides = [1, 1]} : vector<4x132xf32> to vector<4x130xf32>
    %cst_12 = arith.constant dense<0.000000e+00> : vector<8x130xf32>
    %16 = tpu.matmul %14, %15, %cst_12 {dimension_numbers = #tpu.dot_dimension_numbers<[1], [0], [0], [1], [0, 0, 1, 1], [], []>} : vector<8x4xf32>, vector<4x130xf32>, vector<8x130xf32> -> vector<8x130xf32>
    %17 = arith.addf %12, %16 : vector<8x130xf32>
    %c0_13 = arith.constant 0 : index
    %c0_14 = arith.constant 0 : index
    %18 = vector.load %arg4[%c0_13, %c0_14] : memref<8x1xf32, #tpu.memory_space<vmem>>, vector<8x1xf32>
    %19 = vector.broadcast %18 : vector<8x1xf32> to vector<8x130xf32>
    %20 = arith.addf %17, %19 : vector<8x130xf32>
    %c128_i32 = arith.constant 128 : i32
    %21 = arith.muli %arg1, %c128_i32 : i32
    %c1_i32 = arith.constant 1 : i32
    %22 = arith.subi %21, %c1_i32 : i32
    %23 = tpu.iota {dimensions = array<i32: 1>} : vector<1x130xi32>
    %24 = vector.broadcast %22 : i32 to vector<1x130xi32>
    %25 = arith.addi %24, %23 : vector<1x130xi32>
    %c0_i32 = arith.constant 0 : i32
    %26 = vector.broadcast %c0_i32 : i32 to vector<1x130xi32>
    %27 = arith.cmpi sge, %25, %26 : vector<1x130xi32>
    %c16_i32 = arith.constant 16 : i32
    %28 = vector.broadcast %c16_i32 : i32 to vector<1x130xi32>
    %29 = arith.cmpi slt, %25, %28 : vector<1x130xi32>
    %30 = arith.andi %27, %29 : vector<1x130xi1>
    %cst_15 = arith.constant 0.000000e+00 : f32
    %31 = vector.shape_cast %30 : vector<1x130xi1> to vector<1x130xi1>
    %32 = vector.broadcast %31 : vector<1x130xi1> to vector<8x130xi1>
    %33 = vector.broadcast %cst_15 : f32 to vector<8x130xf32>
    %34 = arith.select %32, %20, %33 : vector<8x130xi1>, vector<8x130xf32>
    %c0_16 = arith.constant 0 : index
    %c0_17 = arith.constant 0 : index
    %35 = vector.load %arg5[%c0_16, %c0_17] : memref<130x260xf32, #tpu.memory_space<vmem>>, vector<130x260xf32>
    %cst_18 = arith.constant dense<0.000000e+00> : vector<8x260xf32>
    %36 = tpu.matmul %34, %35, %cst_18 {dimension_numbers = #tpu.dot_dimension_numbers<[1], [0], [0], [1], [0, 0, 1, 1], [], []>} : vector<8x130xf32>, vector<130x260xf32>, vector<8x260xf32> -> vector<8x260xf32>
    %cst_19 = arith.constant 0.000000e+00 : f32
    %37 = vector.broadcast %cst_19 : f32 to vector<8x256xf32>
    %c0_20 = arith.constant 0 : index
    %c0_21 = arith.constant 0 : index
    %c0_22 = arith.constant 0 : index
    %38 = vector.load %arg6[%c0_20, %c0_21, %c0_22] : memref<3x8x8xf32, #tpu.memory_space<vmem>>, vector<1x8x8xf32>
    %39 = vector.shape_cast %38 : vector<1x8x8xf32> to vector<8x8xf32>
    %40 = vector.extract_strided_slice %36 {offsets = [0, 1], sizes = [8, 256], strides = [1, 1]} : vector<8x260xf32> to vector<8x256xf32>
    %cst_23 = arith.constant dense<0.000000e+00> : vector<8x256xf32>
    %41 = tpu.matmul %39, %40, %cst_23 {dimension_numbers = #tpu.dot_dimension_numbers<[1], [0], [0], [1], [0, 0, 1, 1], [], []>} : vector<8x8xf32>, vector<8x256xf32>, vector<8x256xf32> -> vector<8x256xf32>
    %42 = arith.addf %37, %41 : vector<8x256xf32>
    %c1_24 = arith.constant 1 : index
    %c0_25 = arith.constant 0 : index
    %c0_26 = arith.constant 0 : index
    %43 = vector.load %arg6[%c1_24, %c0_25, %c0_26] : memref<3x8x8xf32, #tpu.memory_space<vmem>>, vector<1x8x8xf32>
    %44 = vector.shape_cast %43 : vector<1x8x8xf32> to vector<8x8xf32>
    %45 = vector.extract_strided_slice %36 {offsets = [0, 2], sizes = [8, 256], strides = [1, 1]} : vector<8x260xf32> to vector<8x256xf32>
    %cst_27 = arith.constant dense<0.000000e+00> : vector<8x256xf32>
    %46 = tpu.matmul %44, %45, %cst_27 {dimension_numbers = #tpu.dot_dimension_numbers<[1], [0], [0], [1], [0, 0, 1, 1], [], []>} : vector<8x8xf32>, vector<8x256xf32>, vector<8x256xf32> -> vector<8x256xf32>
    %47 = arith.addf %42, %46 : vector<8x256xf32>
    %c2_28 = arith.constant 2 : index
    %c0_29 = arith.constant 0 : index
    %c0_30 = arith.constant 0 : index
    %48 = vector.load %arg6[%c2_28, %c0_29, %c0_30] : memref<3x8x8xf32, #tpu.memory_space<vmem>>, vector<1x8x8xf32>
    %49 = vector.shape_cast %48 : vector<1x8x8xf32> to vector<8x8xf32>
    %50 = vector.extract_strided_slice %36 {offsets = [0, 3], sizes = [8, 256], strides = [1, 1]} : vector<8x260xf32> to vector<8x256xf32>
    %cst_31 = arith.constant dense<0.000000e+00> : vector<8x256xf32>
    %51 = tpu.matmul %49, %50, %cst_31 {dimension_numbers = #tpu.dot_dimension_numbers<[1], [0], [0], [1], [0, 0, 1, 1], [], []>} : vector<8x8xf32>, vector<8x256xf32>, vector<8x256xf32> -> vector<8x256xf32>
    %52 = arith.addf %47, %51 : vector<8x256xf32>
    %c0_32 = arith.constant 0 : index
    %c0_33 = arith.constant 0 : index
    %53 = vector.load %arg7[%c0_32, %c0_33] : memref<8x1xf32, #tpu.memory_space<vmem>>, vector<8x1xf32>
    %54 = vector.broadcast %53 : vector<8x1xf32> to vector<8x256xf32>
    %55 = arith.addf %52, %54 : vector<8x256xf32>
    %c0_34 = arith.constant 0 : index
    %c0_35 = arith.constant 0 : index
    %c0_36 = arith.constant 0 : index
    %56 = vector.load %arg8[%c0_34, %c0_35, %c0_36] : memref<1x8x256xf32, #tpu.memory_space<vmem>>, vector<1x8x256xf32>
    %57 = vector.shape_cast %56 : vector<1x8x256xf32> to vector<8x256xf32>
    %58 = vector.shape_cast %55 : vector<8x256xf32> to vector<1x8x256xf32>
    tpu.vector_store %arg8[%c0_34, %c0_35, %c0_36], %58 {strides = array<i32>} : memref<1x8x256xf32, #tpu.memory_space<vmem>>, vector<1x8x256xf32>,
    return
  }
  func.func @transform_0(%arg0: i32, %arg1: i32) -> (i32, i32, i32, i32) {
    %c0_i32 = arith.constant 0 : i32
    %c0_i32_0 = arith.constant 0 : i32
    %c0_i32_1 = arith.constant 0 : i32
    return %arg0, %arg1, %c0_i32, %c0_i32_0 : i32, i32, i32, i32
  }
  func.func @transform_1(%arg0: i32, %arg1: i32) -> (i32, i32, i32) {
    %c0_i32 = arith.constant 0 : i32
    %c0_i32_0 = arith.constant 0 : i32
    %c0_i32_1 = arith.constant 0 : i32
    %c0_i32_2 = arith.constant 0 : i32
    return %c0_i32, %c0_i32_0, %c0_i32_1 : i32, i32, i32
  }
  func.func @transform_2(%arg0: i32, %arg1: i32) -> (i32, i32) {
    %c0_i32 = arith.constant 0 : i32
    %c0_i32_0 = arith.constant 0 : i32
    %c0_i32_1 = arith.constant 0 : i32
    return %c0_i32, %c0_i32_0 : i32, i32
  }
  func.func @transform_3(%arg0: i32, %arg1: i32) -> (i32, i32) {
    %c0_i32 = arith.constant 0 : i32
    %c0_i32_0 = arith.constant 0 : i32
    %c0_i32_1 = arith.constant 0 : i32
    return %c0_i32, %c0_i32_0 : i32, i32
  }
  func.func @transform_4(%arg0: i32, %arg1: i32) -> (i32, i32, i32) {
    %c0_i32 = arith.constant 0 : i32
    %c0_i32_0 = arith.constant 0 : i32
    %c0_i32_1 = arith.constant 0 : i32
    %c0_i32_2 = arith.constant 0 : i32
    return %c0_i32, %c0_i32_0, %c0_i32_1 : i32, i32, i32
  }
  func.func @transform_5(%arg0: i32, %arg1: i32) -> (i32, i32) {
    %c0_i32 = arith.constant 0 : i32
    %c0_i32_0 = arith.constant 0 : i32
    %c0_i32_1 = arith.constant 0 : i32
    return %c0_i32, %c0_i32_0 : i32, i32
  }
  func.func @transform_6(%arg0: i32, %arg1: i32) -> (i32, i32, i32) {
    %c0_i32 = arith.constant 0 : i32
    %c0_i32_0 = arith.constant 0 : i32
    return %arg0, %c0_i32, %arg1 : i32, i32, i32
  }
}

</mosaic_0001>

<bundles_post_ra>
// kernel: tpu_custom_call.1
= control target key start
LH: loop header
LB: loop body
LE: loop exit
PB: predicated region body
PF: predicated region fallthrough
CT: control target
= control target key end

     0   :  { %11 = vsyncpa [#allocation3], 0  ;;  %s1631_s0 = inlined_call_operand.vmem [shape: f32[2,1,4,132], index: 0, kind: input, shape index: {}]   ;;  %s1632_s1 = inlined_call_operand.vmem [shape: f32[3,8,4], index: 1, kind: input, shape index: {}]   ;;  %s1633_s2 = inlined_call_operand.vmem [shape: f32[8,1], index: 2, kind: input, shape index: {}]   ;;  %s1634_s3 = inlined_call_operand.hbm [shape: f32[130,260], index: 3, kind: input, shape index: {}]   ;;  %s1635_s4 = inlined_call_operand.vmem [shape: f32[3,8,8], index: 4, kind: input, shape index: {}]   ;;  %s1636_s5 = inlined_call_operand.vmem [shape: f32[8,1], index: 5, kind: input, shape index: {}]   ;;  %s1637_s6 = inlined_call_operand.hbm [shape: f32[2,8,256], index: 6, kind: output, shape index: {}]  }
   0x1   :  { %12 = vsyncpa [#allocation4], 0 }
   0x2   :  { %14 = vsyncpa [#allocation4 + $0x1], 0  ;;  %s1434_s21 = smov 0   ;;  %s1436_s22 = smov 0  }
   0x3   :  { %s1438_s23 = smov 0   ;;  %s1440_s24 = smov 0  }
   0x4   :  { %s1442_s25 = smov 0   ;;  %s1444_s26 = smov 0  }
   0x5 LB: > { %s1168_s27 = sadd.s32 4294967295, %s1388_s26   ;;  %s1169_s28 = sadd.s32 4294967294, %s1388_s26   ;;  %s1388_s26 = sphi %s1444_s26, %s20_s26   ;;  %s1384_s25 = sphi %s1442_s25, %s1646_s25   ;;  %s1380_s24 = sphi %s1440_s24, %s1645_s24   ;;  %s1376_s23 = sphi %s1438_s23, %s1644_s23   ;;  %s1372_s22 = sphi %s1436_s22, %s1643_s22   ;;  %s1368_s21 = sphi %s1434_s21, %s1642_s21  }
   0x6   : > { %s32_s29 = sadd.s32 1, %s1384_s25  ;;  %s174_s30 = sadd.s32 1, %s1376_s23 }
   0x7   : > { %p34_p0 = scmp.ge.s32.totalorder %s32_s29, 2  ;;  %p184_p1 = scmp.ne.s32.totalorder %s1376_s23, %s1372_s22 }
   0x8   : > { %p185_p2 = scmp.eq.s32.totalorder %s1168_s27, 1  ;;  %p190_p3 = scmp.ne.s32.totalorder %s1372_s22, %s1368_s21 }
   0x9   : > { %s1648_s29 = smov (%p34_p0, %s32_s29), 0  ;;  %p191_p5 = scmp.eq.s32.totalorder %s1169_s28, 1 }
   0xa   : > { %p1474_p4 = por %p185_p2, %p184_p1  ;;  %s169_s8 = ssub.s32 %s1384_s25, %s1648_s29 }
   0xb   : > { %p1170_p6 = scmp.ge.s32.totalorder %s1388_s26, 1  ;;  %p172_p7 = scmp.eq.s32.totalorder %s169_s8, 0 }
   0xc   : > { %p1481_p8 = por %p191_p5, %p190_p3  ;;  %p198_p9 = scmp.lt.s32.totalorder %s1388_s26, 3 }
   0xd   : > { %s1487_s10 = scalar_select %p172_p7, %s1376_s23, %s174_s30  }
   0xe   : > { %p1489_p10 = pnand %p1170_p6, %p198_p9  ;;  %p1493_p11 = scmp.eq.s32.totalorder %s1168_s27, 0 }
   0xf   : > { %s1390_s13 = smov [#allocation2]  }
  0x10   : > { %p1212_p12 = pneg %p1489_p10  ;;  %s216_s14 = sshll.u32 %s1390_s13, 4  ;;  %s217_s14 = int_to_ptr.vmem [resolvable:$true] %s216_s14 }
  0x11   : > { %s1293_s15 = scalar_lea.vmem %s217_s14, 6528  ;;  %p1301_p5 = scmp.lt.s32.totalorder %s217_s14, %s217_s14 }
  0x12   : > { %p1213_p13 = pnand %p1493_p11, %p1212_p12  ;;  %p1294_p1 = scmp.ne.s32.totalorder %s217_s14, %s1293_s15 }
  0x13   : > { %p1302_p6 = scmp.lt.s32.totalorder %s1293_s15, %s1293_s15 }
  0x14   : > { %p1284_p0 = pneg %p1213_p13 }
  0x15   : > { %p1303_p7 = por %p1302_p6, %p1301_p5 }
  0x16   : > { %p1296_p2 = pnand %p1294_p1, %p1284_p0 }
  0x18   : > { %p1297_p3 = pneg %p1296_p2 }
  0x1a   : > { %p1304_p9 = pnand %p1303_p7, %p1297_p3 }
  0x1c   : > { %1307 = shalt.err (!%p1304_p9)
}
  0x1d   : > { %s1391_s16 = smov 384   ;;  %s1392_s17 = smov 24  }
  0x1e   : > { %1215 = dma.hbm_to_vmem [thread:$0]  (!%p1213_p13), %s1634_s3, 6528, %s217_s14, [#allocation3], %s1391_s16, %s1391_s16, %s1392_s17  }
  0x1f   : > { %250 = sbr.rel (%p1489_p10) target bundleno = 905 (0x389), region = 44 }
  0x24   : > { %1359 = dma.done.wait (%p1493_p11), [#allocation3], 6528  }
  0x25   : > { %1361 = vsyncadd (%p1493_p11), [#allocation3], 4294960768  ;;  %p284_p12 = scmp.lt.s32.totalorder %s1380_s24, 1  ;;  %v1393_v0 = vmov 0.0   ;;  %v1394_v1 = vmov 0   ;;  %vm310_vm0 = vcmask 1043456  }
  0x26   : > { %379 = vmatprep.mubr.f32.mxu0 %v1393_v0  ;;  %457 = vmatprep.mubr.f32.mxu1 %v1393_v0  ;;  %s1395_s11 = smov 126   ;;  %s1396_s12 = smov 127   ;;  %vm306_vm1 = vcmask 31744   ;;  %v295_v4 = vld [vmem:[%s1632_s1] sm:$0xff]  ;;  %v626_v5 = vld [vmem:[#allocation2 + $0x170] sm:$0xff]  ;;  %v625_v6 = vld [vmem:[#allocation2 + $0x168] sm:$0xff] }
  0x27   : > { %s285_s20 = scalar_select %p284_p12, %s1380_s24, 1  ;;  %1279 = vset.pattern.permute.xlu0 %v1394_v1  ;;  %1280 = vset.pattern.permute.xlu1 %v1394_v1  ;;  %v623_v7 = vld [vmem:[#allocation2 + $0x158] sm:$0xff]  ;;  %v552_v8 = vld [vmem:[%s1633_s2] sm:$0xff]  ;;  %v622_v9 = vld [vmem:[#allocation2 + $0x150] sm:$0xff]  ;;  %vm304_vm2 = vcmask 1039360   ;;  %vm470_vm3 = vcmask 1031168  }
  0x28   : > { %v620_v10 = vld [vmem:[#allocation2 + $0x140] sm:$0xff]  ;;  %v619_v11 = vld [vmem:[#allocation2 + $0x138] sm:$0xff]  ;;  %v617_v12 = vld [vmem:[#allocation2 + $0x128] sm:$0xff]  ;;  %vm635_vm4 = vcmask 1041408   ;;  %vm802_vm8 = vcmask 64512   ;;  %vm969_vm9 = vcmask 1022976  }
  0x29   : > { %s1204_s27 = sshll.u32 %s285_s20, 3  ;;  %v616_v13 = vld [vmem:[#allocation2 + $0x120] sm:$0xff]  ;;  %v614_v14 = vld [vmem:[#allocation2 + $0x110] sm:$0xff]  ;;  %v613_v15 = vld [vmem:[#allocation2 + $0x108] sm:$0xff]  ;;  %s281_s16 = sand.u32 1, %s1372_s22  }
  0x2a   : > { %s292_s8 = scalar_lea.vmem %s1631_s0, %s1204_s27  ;;  %v611_v16 = vld [vmem:[#allocation2 + $0xf8] sm:$0xff]  ;;  %v610_v17 = vld [vmem:[#allocation2 + $0xf0] sm:$0xff]  ;;  %v608_v18 = vld [vmem:[#allocation2 + $0xe0] sm:$0xff]  ;;  %s1397_s27 = smov 125  }
  0x2b   : > { %v294_v2 = vld [vmem:[%s292_s8] sm:$0xff]  ;;  %v607_v19 = vld [vmem:[#allocation2 + $0xd8] sm:$0xff]  ;;  %v605_v20 = vld [vmem:[#allocation2 + $0xc8] sm:$0xff]  ;;  %s1175_s17 = sshll.u32 %s281_s16, 4  ;;  %s1205_s18 = sshll.u32 %s1380_s24, 8 }
  0x2c   : > { %466 = vrot.lane.b32.xlu1 %v294_v2, %s1395_s11  ;;  %300 = vrot.lane.b32.xlu0 %v294_v2, %s1396_s12  ;;  %v299_v3 = vcombine.high %v294_v2, %v294_v2  ;;  %v604_v21 = vld [vmem:[#allocation2 + $0xc0] sm:$0xff]  ;;  %v602_v22 = vld [vmem:[#allocation2 + $0xb0] sm:$0xff]  ;;  %v601_v23 = vld [vmem:[#allocation2 + $0xa8] sm:$0xff]  ;;  %s283_s19 = scalar_lea.vmem [#allocation5], %s1175_s17  ;;  %s1075_s30 = scalar_lea.hbm %s1637_s6, %s1205_s18 }
  0x2d   : > { %v599_v24 = vld [vmem:[#allocation2 + $0x98] sm:$0xff]  ;;  %v598_v25 = vld [vmem:[#allocation2 + $0x90] sm:$0xff]  ;;  %v596_v26 = vld [vmem:[#allocation2 + $0x80] sm:$0xff]  ;;  %s1077_s20 = sshll.u32 %s283_s19, 4  ;;  %s1061_s8 = scalar_lea.sflag [#allocation4], %s281_s16  ;;  %s1078_s20 = int_to_ptr.vmem [resolvable:$true] %s1077_s20 }
  0x2e   : > { %1182 = vmatprep.subr.msk.mxu1 %vm310_vm0, %v299_v3  ;;  %v595_v27 = vld [vmem:[#allocation2 + $0x78] sm:$0xff]  ;;  %v593_v28 = vld [vmem:[#allocation2 + $0x68] sm:$0xff]  ;;  %v592_v29 = vld [vmem:[#allocation2 + $0x60] sm:$0xff] }
  0x2f   : > { %1183 = vmatpush1.msk.msra.mxu1 %vm310_vm0, %v294_v2  ;;  %v590_v30 = vld [vmem:[#allocation2 + $0x50] sm:$0xff]  ;;  %v1178_v35 = vld [vmem:[%s1632_s1 + $0x8] sm:$0xff]  ;;  %v627_v39 = vld [vmem:[#allocation2 + $0x178] sm:$0xff] }
  0x30   : > { %468 = vrot.lane.b32.xlu1 %v299_v3, %s1395_s11  ;;  %302 = vrot.lane.b32.xlu0 %v299_v3, %s1396_s12  ;;  %v1185_v38 = vld [vmem:[%s1632_s1 + $0x10] sm:$0xff]  ;;  %v624_v40 = vld [vmem:[#allocation2 + $0x160] sm:$0xff]  ;;  %v621_v41 = vld [vmem:[#allocation2 + $0x148] sm:$0xff] }
  0x31   : > { %1184 = vmatmul.mubr.msk.f32.vlgmr.msra.gmra.mxu1 %vm306_vm1, %v295_v4  ;;  %645 = vmatprep.subr.mxu1 %v626_v5  ;;  %v618_v42 = vld [vmem:[#allocation2 + $0x130] sm:$0xff]  ;;  %v615_v43 = vld [vmem:[#allocation2 + $0x118] sm:$0xff]  ;;  %v612_v44 = vld [vmem:[#allocation2 + $0x100] sm:$0xff]  ;;  %v562_v4 = vlaneseq }
  0x32   : > { %646 = vmatpush1.msra.mxu1 %v625_v6  ;;  %709 = vmatprep.mubr.f32.mxu1 %v1393_v0  ;;  %v609_v45 = vld [vmem:[#allocation2 + $0xe8] sm:$0xff]  ;;  %v606_v46 = vld [vmem:[#allocation2 + $0xd0] sm:$0xff]  ;;  %v603_v47 = vld [vmem:[#allocation2 + $0xb8] sm:$0xff] }
  0x33   : > { %647 = vmatprep.subr.mxu1 %v623_v7  ;;  %v600_v48 = vld [vmem:[#allocation2 + $0xa0] sm:$0xff]  ;;  %v597_v49 = vld [vmem:[#allocation2 + $0x88] sm:$0xff]  ;;  %v594_v50 = vld [vmem:[#allocation2 + $0x70] sm:$0xff]  ;;  %v563_v5 = vand.u32 127, %v562_v4 }
  0x34   : > { %555 = vperm.xlu0 %1279, %v552_v8   ;;  %648 = vmatpush1.msra.mxu1 %v622_v9  ;;  %v589_v51 = vld [vmem:[#allocation2 + $0x48] sm:$0xff]  ;;  %v591_v52 = vld [vmem:[#allocation2 + $0x58] sm:$0xff]  ;;  %v586_v54 = vld [vmem:[#allocation2 + $0x30] sm:$0xff] }
  0x35   : > { %649 = vmatprep.subr.mxu1 %v620_v10  ;;  %v587_v53 = vld [vmem:[#allocation2 + $0x38] sm:$0xff]  ;;  %v588_v55 = vld [vmem:[#allocation2 + $0x40] sm:$0xff]  ;;  %v585_v58 = vld [vmem:[#allocation2 + $0x28] sm:$0xff]  ;;  %v566_v6 = vadd.s32 4294967295, %v563_v5 }
  0x36   : > { %650 = vmatpush1.msra.mxu1 %v619_v11  ;;  %v584_v56 = vld [vmem:[#allocation2 + $0x20] sm:$0xff]  ;;  %v583_v57 = vld [vmem:[#allocation2 + $0x18] sm:$0xff]  ;;  %v581_v59 = vld [vmem:[#allocation2 + $0x8] sm:$0xff] }
  0x37   : > { %651 = vmatprep.subr.mxu1 %v617_v12  ;;  %v582_v60 = vld [vmem:[#allocation2 + $0x10] sm:$0xff]  ;;  %v580_v61 = vld [vmem:[#allocation2] sm:$0xff]  ;;  %v629_v62 = vld [vmem:[#allocation2 + $0x188] sm:$0x3]  ;;  %vm568_vm5 = vcmp.ge.s32.totalorder %v566_v6, 0  ;;  %vm570_vm6 = vcmp.lt.s32.totalorder %v566_v6, 16 }
  0x38   : > { %652 = vmatpush1.msra.mxu1 %v616_v13  ;;  %v628_v63 = vld [vmem:[#allocation2 + $0x180] sm:$0x3]  ;;  %v630_v1 = vld [vmem:[#allocation2 + $0x190] sm:$0x3]  ;;  %vm572_vm7 = vmand %vm568_vm5, %vm570_vm6 }
  0x39   : > { %653 = vmatprep.subr.mxu1 %v614_v14 }
  0x3a   : > { %654 = vmatpush1.msra.mxu1 %v613_v15 }
  0x3b   : > { %655 = vmatprep.subr.mxu1 %v611_v16 }
  0x3c   : > { %656 = vmatpush1.msra.mxu1 %v610_v17 }
  0x3d   : > { %657 = vmatprep.subr.mxu1 %v608_v18 }
  0x3e   : > { %658 = vmatpush1.msra.mxu1 %v607_v19  ;;  %v1050_v19 = vld [vmem:[%s1636_s5] sm:$0xff] }
  0x3f   : > { %659 = vmatprep.subr.mxu1 %v605_v20 }
  0x40   : > { %660 = vmatpush1.msra.mxu1 %v604_v21 }
  0x41   : > { %661 = vmatprep.subr.mxu1 %v602_v22 }
  0x42   : > { %662 = vmatpush1.msra.mxu1 %v601_v23 }
  0x43   : > { %663 = vmatprep.subr.mxu1 %v599_v24 }
  0x44   : > { %664 = vmatpush1.msra.mxu1 %v598_v25 }
  0x45   : > { %665 = vmatprep.subr.mxu1 %v596_v26 }
  0x46   : > { %666 = vmatpush1.msra.mxu1 %v595_v27 }
  0x47   : > { %667 = vmatprep.subr.mxu1 %v593_v28  ;;  %v1194_v28 = vld [vmem:[%s1635_s4 + $0x8] sm:$0xff] }
  0x48   : > { %668 = vmatpush1.msra.mxu1 %v592_v29 }
  0x49   : > { %669 = vmatprep.subr.mxu1 %v590_v30 }
  0x4a   : > { %670 = vmatpush1.msra.mxu1 %v589_v51 }
  0x4b   : > { %671 = vmatprep.subr.mxu1 %v587_v53 }
  0x4c   : > { %672 = vmatpush1.msra.mxu1 %v586_v54 }
  0x4d   : > { %673 = vmatprep.subr.mxu1 %v584_v56 }
  0x4e   : > { %674 = vmatpush1.msra.mxu1 %v583_v57 }
  0x4f   : > { %675 = vmatprep.subr.mxu1 %v581_v59 }
  0x50   : > { %676 = vmatpush1.msra.mxu1 %v580_v61 }
  0x51   : > { %1189 = vmatprep.subr.msk.mxu1 %vm635_vm4, %v629_v62 }
  0x52   : > { %1190 = vmatpush2.msk.msra.mxu1 %vm635_vm4, %v628_v63 }
  0x9e   : > { %v467_v31 = vpop.permute.xlu1 %466  ;;  %v301_v32 = vpop.permute.xlu0 %300 }
  0xa2   : > { %v469_v33 = vpop.permute.xlu1 %468  ;;  %v303_v34 = vpop.permute.xlu0 %302 }
  0xa3   : > { %1179 = vmatprep.subr.msk.mxu0 %vm310_vm0, %v303_v34  ;;  %v305_v36 = vsel %vm304_vm2, %v301_v32, %v303_v34  ;;  %v471_v37 = vsel %vm470_vm3, %v467_v31, %v469_v33  ;;  %v786_v32 = vld [vmem:[%s1635_s4] sm:$0xff] }
  0xa4   : > { %1180 = vmatpush1.msk.msra.mxu0 %vm310_vm0, %v305_v36  ;;  %v1197_v36 = vld [vmem:[%s1635_s4 + $0x10] sm:$0xff] }
  0xa5   : > { %1181 = vmatmul.mubr.msk.f32.vlgmr.msra.gmra.mxu0 %vm306_vm1, %v1178_v35  ;;  %1186 = vmatprep.subr.msk.mxu0 %vm310_vm0, %v469_v33 }
  0xa6   : > { %1187 = vmatpush1.msk.msra.mxu0 %vm310_vm0, %v471_v37  ;;  %543 = vmatprep.mubr.f32.mxu0 %v1393_v0 }
  0xa7   : > { %716 = vmatprep.subr.mxu0 %v1393_v0 }
  0xa9   : > { %1188 = vmatmul.mubr.msk.f32.vlgmr.msra.gmra.mxu0 %vm306_vm1, %v1185_v38 }
  0xaa   : > { %717 = vmatpush1.msra.mxu0 %v627_v39  ;;  %780 = vmatprep.mubr.f32.mxu0 %v1393_v0 }
  0xab   : > { %718 = vmatprep.subr.mxu0 %v1393_v0 }
  0xac   : > { %719 = vmatpush1.msra.mxu0 %v624_v40 }
  0xad   : > { %720 = vmatprep.subr.mxu0 %v1393_v0 }
  0xae   : > { %721 = vmatpush1.msra.mxu0 %v621_v41 }
  0xaf   : > { %722 = vmatprep.subr.mxu0 %v1393_v0  ;;  %v556_v11 = vpop.permute.xlu0 %555 }
  0xb0   : > { %723 = vmatpush1.msra.mxu0 %v618_v42 }
  0xb1   : > { %724 = vmatprep.subr.mxu0 %v1393_v0 }
  0xb2   : > { %725 = vmatpush1.msra.mxu0 %v615_v43 }
  0xb3   : > { %726 = vmatprep.subr.mxu0 %v1393_v0 }
  0xb4   : > { %727 = vmatpush1.msra.mxu0 %v612_v44 }
  0xb5   : > { %728 = vmatprep.subr.mxu0 %v1393_v0 }
  0xb6   : > { %729 = vmatpush1.msra.mxu0 %v609_v45 }
  0xb7   : > { %730 = vmatprep.subr.mxu0 %v1393_v0 }
  0xb8   : > { %731 = vmatpush1.msra.mxu0 %v606_v46 }
  0xb9   : > { %732 = vmatprep.subr.mxu0 %v1393_v0 }
  0xba   : > { %733 = vmatpush1.msra.mxu0 %v603_v47 }
  0xbb   : > { %734 = vmatprep.subr.mxu0 %v1393_v0 }
  0xbc   : > { %735 = vmatpush1.msra.mxu0 %v600_v48 }
  0xbd   : > { %736 = vmatprep.subr.mxu0 %v1393_v0 }
  0xbe   : > { %737 = vmatpush1.msra.mxu0 %v597_v49 }
  0xbf   : > { %738 = vmatprep.subr.mxu0 %v1393_v0 }
  0xc0   : > { %739 = vmatpush1.msra.mxu0 %v594_v50 }
  0xc1   : > { %740 = vmatprep.subr.mxu0 %v1393_v0 }
  0xc2   : > { %741 = vmatpush1.msra.mxu0 %v591_v52 }
  0xc3   : > { %742 = vmatprep.subr.mxu0 %v1393_v0 }
  0xc4   : > { %743 = vmatpush1.msra.mxu0 %v588_v55 }
  0xc5   : > { %744 = vmatprep.subr.mxu0 %v1393_v0 }
  0xc6   : > { %745 = vmatpush1.msra.mxu0 %v585_v58 }
  0xc7   : > { %746 = vmatprep.subr.mxu0 %v1393_v0 }
  0xc8   : > { %747 = vmatpush1.msra.mxu0 %v582_v60 }
  0xc9   : > { %778 = vmatprep.subr.mxu0 %v1393_v0 }
  0xca   : > { %1192 = vmatpush2.msk.msra.mxu0 %vm635_vm4, %v630_v1 }
  0xf1   : > { %v459_v2 = vpop.f32.mrf.mxu1 }
  0xf3   : > { %v461_v3 = vpop.f32.mrf.mxu1 }
 0x165   : > { %v381_v7 = vpop.f32.mrf.mxu0 }
 0x166   : > { %v460_v9 = vadd.f32 %v459_v2, %v381_v7 }
 0x167   : > { %v383_v8 = vpop.f32.mrf.mxu0 }
 0x169   : > { %v545_v10 = vpop.f32.mrf.mxu0 }
 0x16a   : > { %v550_v12 = vadd.f32 %v545_v10, %v460_v9 }
 0x16b   : > { %v547_v13 = vpop.f32.mrf.mxu0 }
 0x16c   : > { %v558_v14 = vadd.f32 %v556_v11, %v550_v12 }
 0x16e   : > { %1191 = vmatmul.mubr.msk.f32.vlgmr.msra.gmra.mxu1 %vm572_vm7, %v558_v14  ;;  %1193 = vmatmul.mubr.msk.f32.vlgmr.msra.gmra.mxu0 %vm572_vm7, %v558_v14 }
 0x16f   : > { %870 = vmatprep.mubr.f32.mxu1 %v1393_v0  ;;  %954 = vmatprep.mubr.f32.mxu0 %v1393_v0 }
 0x22e   : > { %v711_v15 = vpop.f32.mrf.mxu1  ;;  %v782_v16 = vpop.f32.mrf.mxu0 }
 0x22f   : > { %796 = vrot.lane.b32.xlu1 %v782_v16, %s1395_s11  ;;  %792 = vrot.lane.b32.xlu0 %v711_v15, %s1395_s11 }
 0x230   : > { %v784_v17 = vpop.f32.mrf.mxu0  ;;  %v713_v18 = vpop.f32.mrf.mxu1 }
 0x233   : > { %877 = vrot.lane.b32.xlu1 %v711_v15, %s1396_s12  ;;  %881 = vrot.lane.b32.xlu0 %v782_v16, %s1396_s12 }
 0x237   : > { %965 = vrot.lane.b32.xlu0 %v713_v18, %s1397_s27  ;;  %794 = vrot.lane.b32.xlu1 %v713_v18, %s1395_s11  ;;  %s1308_s11 = scalar_lea.vmem %s1078_s20, 256 }
 0x238   : > { %p1309_p10 = scmp.ne.s32.totalorder %s1078_s20, %s1308_s11 }
 0x23a   : > { %p1310_p11 = pnand %p1309_p10, %p1474_p4 }
 0x23b   : > { %963 = vrot.lane.b32.xlu0 %v711_v15, %s1397_s27  ;;  %879 = vrot.lane.b32.xlu1 %v713_v18, %s1396_s12  ;;  %s1398_s12 = smov [#allocation5]  }
 0x23c   : > { %p1311_p13 = pneg %p1310_p11  ;;  %s1312_s24 = sshll.u32 %s1398_s12, 4  ;;  %s1313_s24 = int_to_ptr.vmem [resolvable:$false] %s1312_s24 }
 0x23d   : > { %s1314_s13 = scalar_lea.vmem %s1313_s24, 512  ;;  %p1315_p0 = scmp.lt.s32.totalorder %s1078_s20, %s1313_s24 }
 0x23e   : > { %p1316_p1 = scmp.lt.s32.totalorder %s1314_s13, %s1308_s11 }
 0x23f   : > { %967 = vrot.lane.b32.xlu1 %v782_v16, %s1397_s27 }
 0x240   : > { %p1317_p2 = por %p1316_p1, %p1315_p0 }
 0x242   : > { %p1318_p3 = pnand %p1317_p2, %p1311_p13 }
 0x243   : > { %1053 = vperm.xlu1 %1280, %v1050_v19  }
 0x2a1   : > { %v797_v20 = vpop.permute.xlu1 %796  ;;  %v793_v21 = vpop.permute.xlu0 %792 }
 0x2a5   : > { %v878_v22 = vpop.permute.xlu1 %877  ;;  %v882_v23 = vpop.permute.xlu0 %881 }
 0x2a9   : > { %v795_v24 = vpop.permute.xlu1 %794  ;;  %v966_v25 = vpop.permute.xlu0 %965 }
 0x2aa   : > { %v798_v26 = vsel %vm470_vm3, %v793_v21, %v795_v24  ;;  %v799_v27 = vsel %vm470_vm3, %v795_v24, %v797_v20 }
 0x2ab   : > { %836 = vmatprep.subr.mxu1 %v799_v27 }
 0x2ac   : > { %837 = vmatpush1.msra.mxu1 %v798_v26 }
 0x2ad   : > { %v880_v29 = vpop.permute.xlu1 %879  ;;  %1195 = vmatmul.mubr.msk.f32.vlgmr.msra.gmra.mxu1 %vm802_vm8, %v1194_v28  ;;  %v964_v33 = vpop.permute.xlu0 %963 }
 0x2ae   : > { %v883_v30 = vsel %vm304_vm2, %v878_v22, %v880_v29  ;;  %v884_v31 = vsel %vm304_vm2, %v880_v29, %v882_v23  ;;  %1041 = vmatprep.mubr.f32.mxu1 %v1393_v0  ;;  %v970_v37 = vsel %vm969_vm9, %v964_v33, %v966_v25 }
 0x2af   : > { %920 = vmatprep.subr.mxu0 %v884_v31 }
 0x2b0   : > { %921 = vmatpush1.msra.mxu0 %v883_v30 }
 0x2b1   : > { %v968_v34 = vpop.permute.xlu1 %967  ;;  %1196 = vmatmul.mubr.msk.f32.vlgmr.msra.gmra.mxu0 %vm802_vm8, %v786_v32 }
 0x2b2   : > { %v971_v35 = vsel %vm969_vm9, %v966_v25, %v968_v34 }
 0x2b3   : > { %1007 = vmatprep.subr.mxu1 %v971_v35 }
 0x2b4   : > { %1008 = vmatpush1.msra.mxu1 %v970_v37 }
 0x2b5   : > { %1198 = vmatmul.mubr.msk.f32.vlgmr.msra.gmra.mxu1 %vm802_vm8, %v1197_v36 }
 0x2be   : > { %v1054_v43 = vpop.permute.xlu1 %1053 }
 0x36d   : > { %v872_v0 = vpop.f32.mrf.mxu1 }
 0x36f   : > { %v874_v39 = vpop.f32.mrf.mxu1 }
 0x371   : > { %v956_v38 = vpop.f32.mrf.mxu0 }
 0x372   : > { %v957_v41 = vadd.f32 %v956_v38, %v872_v0 }
 0x373   : > { %v958_v40 = vpop.f32.mrf.mxu0 }
 0x374   : > { %v959_v44 = vadd.f32 %v958_v40, %v874_v39 }
 0x375   : > { %v1043_v42 = vpop.f32.mrf.mxu1 }
 0x376   : > { %v1048_v45 = vadd.f32 %v1043_v42, %v957_v41 }
 0x377   : > { %v1045_v46 = vpop.f32.mrf.mxu1 }
 0x378   : > { %v1049_v47 = vadd.f32 %v1045_v46, %v959_v44  ;;  %v1056_v48 = vadd.f32 %v1054_v43, %v1048_v45 }
 0x37a   : > { %v1057_v49 = vadd.f32 %v1054_v43, %v1049_v47  ;;  %1058 = vst [vmem:[%s283_s19] sm:$0xff] %v1056_v48 }
 0x37c   : > { %1059 = vst [vmem:[%s283_s19 + $0x8] sm:$0xff] %v1057_v49 }
 0x37d   : > { %1321 = shalt.err (!%p1318_p3)
}
 0x37e   : > { %s1322_s14 = scalar_lea.hbm %s1075_s30, 256  ;;  %s1326_s17 = scalar_lea.hbm %s1637_s6, 512 }
 0x37f   : > { %p1323_p5 = scmp.ne.s32.totalorder %s1075_s30, %s1322_s14  ;;  %p1327_p9 = scmp.lt.s32.totalorder %s1075_s30, %s1637_s6 }
 0x380   : > { %p1328_p12 = scmp.lt.s32.totalorder %s1326_s17, %s1322_s14 }
 0x381   : > { %p1324_p6 = pnand %p1323_p5, %p1474_p4 }
 0x382   : > { %p1329_p10 = por %p1328_p12, %p1327_p9 }
 0x383   : > { %p1325_p7 = pneg %p1324_p6 }
 0x385   : > { %p1330_p11 = pnand %p1329_p10, %p1325_p7 }
 0x387   : > { %1333 = shalt.err (!%p1330_p11)
}
 0x388   : > { %1210 = dma.vmem_to_hbm [thread:$0]  (%p1474_p4), %s1078_s20, 256, %s1075_s30, %s1061_s8  }
 0x389 PF: > { %p1222_p13 = scmp.ge.s32.totalorder %s1388_s26, 2  ;;  %s1089_s27 = sand.u32 1, %s1368_s21  }
 0x38a   : > { %s1090_s28 = scalar_lea.sflag [#allocation4], %s1089_s27 }
 0x38b   : > { %p1217_p0 = pnand %p1222_p13, %p1481_p8 }
 0x38d   : > { %p1218_p1 = pneg %p1217_p0 }
 0x38f   : > { %1363 = dma.done.wait (%p1218_p1), %s1090_s28, 256  }
 0x390   : > { %1365 = vsyncadd (%p1218_p1), %s1090_s28, 4294967040  ;;  %s20_s26 = sadd.s32 1, %s1388_s26   ;;  %s1642_s21 = smov %s1372_s22 }
 0x391   : > { %p17_p2 = scmp.ge.s32.totalorder %s20_s26, 4   ;;  %s1643_s22 = smov %s1376_s23 }
 0x392   : > { %s1644_s23 = smov %s1487_s10  ;;  %s1645_s24 = smov %s1384_s25 }
 0x393   : > { %s1646_s25 = smov %s1648_s29  ;;  %19 = sbr.rel (!%p17_p2) target bundleno = 5 (0x5), region = 88 }
 0x398   :  { %1095 = vsyncpa [#allocation3], 1 }
 0x399   :  { %1097 = vsyncpa [#allocation3 + $0x1], 1 }
 0x39a   :  { %1098 = vsyncpa [#allocation4], 1 }
 0x39b   :  { %1100 = vsyncpa [#allocation4 + $0x1], 1 }

</bundles_post_ra>
